<compile_context>
chip_gen: v7x
topology: tpu7x:2x2x1
jax: 0.10.0
libtpu: 0.0.40
codegen_flags: <defaults>
</compile_context>

<pallas_src>
import functools

import jax
import jax.numpy as jnp
import numpy as np
from jax import lax
from jax.experimental import pallas as pl
from jax.experimental.pallas import tpu as pltpu

EPS = 1e-5
LANE = 128


def _round_up(x, m):
    return (x + m - 1) // m * m


# ----------------- pass A: conv1 (bias-free) + partial BN stats --------------

def _conv1_stats_kernel(p_ref, w1_ref, stats_ref):
    _, TH, W, K9 = p_ref.shape
    C = stats_ref.shape[-1]

    # single MXU matmul on the host-built im2col patch, f32 accumulation
    patch = p_ref[0].reshape(TH * W, K9)                   # (TH*W, 9*Cin) bf16
    acc = jnp.dot(patch, w1_ref[...], preferred_element_type=jnp.float32)

    # per-block partial BN statistics (merged globally with Chan's formula)
    s = jnp.sum(acc, axis=0, keepdims=True)                # (1, C)
    ss = jnp.sum(acc * acc, axis=0, keepdims=True)         # (1, C)
    stats_ref[...] = jnp.concatenate([s, ss], axis=0).reshape(1, 1, 2, C)


# -------- pass B: conv1 + BN(scale/shift) + ReLU + conv2(taps) + skip --------

def _fused_kernel(p_ref, x_ref, scale_ref, shift_ref, w1_ref, w2_ref,
                  ws_ref, bout_ref, out_ref, act_ref, *, cout):
    _, H, W, K9 = p_ref.shape
    Cin = x_ref.shape[-1]
    C = act_ref.shape[-1]

    # conv1 recomputed (cheaper than storing / re-reading the C-wide y1),
    # then BN (pre-folded per-channel scale/shift) + ReLU, all f32.
    conv1 = jnp.dot(p_ref[0].reshape(H * W, K9), w1_ref[...],
                    preferred_element_type=jnp.float32)
    a = jnp.maximum(conv1 * scale_ref[...] + shift_ref[...], 0.0)

    # padded activation scratch: zero only the 1-pixel halo ring, write the
    # interior exactly once.  (Re-zeroed every step: the scratch is per-core
    # under megacore splitting, so a program_id==0 guard would be unsafe.)
    zrow = jnp.zeros((1, W + 2, C), act_ref.dtype)
    zcol = jnp.zeros((H + 2, 1, C), act_ref.dtype)
    act_ref[0:1, :, :] = zrow
    act_ref[H + 1:H + 2, :, :] = zrow
    act_ref[:, 0:1, :] = zcol
    act_ref[:, W + 1:W + 2, :] = zcol
    act_ref[1:H + 1, 1:W + 1, :] = a.reshape(H, W, C).astype(act_ref.dtype)

    # 1x1 skip conv + fused bias (bs + lambd*b2) seeds the f32 accumulator,
    # then conv2 as 9 accumulated per-tap matmuls (no 9x im2col patch).
    acc = jnp.dot(x_ref[0].reshape(H * W, Cin), ws_ref[...],
                  preferred_element_type=jnp.float32) + bout_ref[...]
    for t in range(9):
        dy, dx = t // 3, t % 3
        tap = act_ref[dy:dy + H, dx:dx + W, :].reshape(H * W, C)
        acc = acc + jnp.dot(tap, w2_ref[t], preferred_element_type=jnp.float32)

    # emit only the real Cout channels (padded lanes never leave the kernel)
    out_ref[...] = acc[:, :cout].reshape(1, H, W, cout).astype(out_ref.dtype)


# ------------------------------- host wrapper --------------------------------

def resblock_forward(x_nchw, packed, row_block=128):
    """ResBlock forward. x_nchw: (N, Cin, H, W) f32 -> (N, Cout, H, W) f32."""
    C = packed["w1i"].shape[-1]            # padded output channels (lane-dense)
    Cin = packed["ws"].shape[0]
    Cout = packed["cout"]

    x = jnp.transpose(x_nchw, (0, 2, 3, 1)).astype(jnp.bfloat16)   # NHWC bf16
    N, H, W, _ = x.shape

    # host-side pre-im2col (single copy of x; kernels see lane-friendly K=9*Cin)
    xpad = jnp.pad(x, ((0, 0), (1, 1), (1, 1), (0, 0)))
    patches = jnp.concatenate(
        [xpad[:, dy:dy + H, dx:dx + W, :] for dy in range(3) for dx in range(3)],
        axis=-1)                                           # (N, H, W, 9*Cin)

    # largest row tile that divides H (pass A outputs only tiny stats blocks)
    th = max(d for d in range(1, min(H, row_block) + 1) if H % d == 0)
    n_h = H // th

    # ---------------- pass A: partial BN statistics ----------------
    flops1 = 2 * N * H * W * (9 * Cin) * C
    bytes1 = patches.size * 2 + packed["w1i"].size * 2 + N * n_h * 2 * C * 4
    stats = pl.pallas_call(
        _conv1_stats_kernel,
        grid=(N, n_h),
        in_specs=[
            pl.BlockSpec((1, th, W, 9 * Cin), lambda n, i: (n, i, 0, 0)),
            pl.BlockSpec((9 * Cin, C), lambda n, i: (0, 0)),
        ],
        out_specs=pl.BlockSpec((1, 1, 2, C), lambda n, i: (n, i, 0, 0)),
        out_shape=jax.ShapeDtypeStruct((N, n_h, 2, C), jnp.float32),
        compiler_params=pltpu.CompilerParams(
            dimension_semantics=("parallel", "parallel"),
            vmem_limit_bytes=48 * 1024 * 1024),
        cost_estimate=pl.CostEstimate(flops=flops1, transcendentals=0,
                                      bytes_accessed=bytes1),
    )(patches, packed["w1i"])

    # ---- Chan-style merge of per-block (sum, sumsq) -> scale/shift (f32) ----
    cnt_b = jnp.float32(th * W)
    total = jnp.float32(N * H * W)
    s_b = stats[:, :, 0, :].reshape(-1, C)                 # (nblocks, C)
    ss_b = stats[:, :, 1, :].reshape(-1, C)
    mean_b = s_b / cnt_b
    m2_b = jnp.maximum(ss_b - s_b * mean_b, 0.0)           # per-block centered
    mean = jnp.sum(s_b, axis=0) / total                    # (C,)
    m2 = jnp.sum(m2_b, axis=0) + cnt_b * jnp.sum(jnp.square(mean_b - mean), axis=0)
    var = m2 / total
    scale = (packed["gamma"] * lax.rsqrt(var + EPS)).reshape(1, C)
    shift = (packed["beta"] - mean * packed["gamma"] * lax.rsqrt(var + EPS)).reshape(1, C)

    # ---------------- pass B: fully fused residual block ----------------
    flops2 = 2 * N * H * W * C * (9 * Cin + 9 * C + Cin)
    bytes2 = ((patches.size + x.size + packed["w1i"].size + packed["w2i"].size
               + packed["ws"].size) * 2 + 3 * C * 4 + N * H * W * Cout * 4)
    out_nhwc = pl.pallas_call(
        functools.partial(_fused_kernel, cout=Cout),
        grid=(N,),
        in_specs=[
            pl.BlockSpec((1, H, W, 9 * Cin), lambda n: (n, 0, 0, 0)),
            pl.BlockSpec((1, H, W, Cin), lambda n: (n, 0, 0, 0)),
            pl.BlockSpec((1, C), lambda n: (0, 0)),
            pl.BlockSpec((1, C), lambda n: (0, 0)),
            pl.BlockSpec((9 * Cin, C), lambda n: (0, 0)),
            pl.BlockSpec((9, C, C), lambda n: (0, 0, 0)),
            pl.BlockSpec((Cin, C), lambda n: (0, 0)),
            pl.BlockSpec((1, C), lambda n: (0, 0)),
        ],
        out_specs=pl.BlockSpec((1, H, W, Cout), lambda n: (n, 0, 0, 0)),
        out_shape=jax.ShapeDtypeStruct((N, H, W, Cout), jnp.float32),
        scratch_shapes=[pltpu.VMEM((H + 2, W + 2, C), jnp.bfloat16)],
        compiler_params=pltpu.CompilerParams(
            dimension_semantics=("parallel",),
            vmem_limit_bytes=48 * 1024 * 1024),
        cost_estimate=pl.CostEstimate(flops=flops2, transcendentals=0,
                                      bytes_accessed=bytes2),
    )(patches, x, scale, shift, packed["w1i"], packed["w2i"],
      packed["ws"], packed["bout"])

    return jnp.transpose(out_nhwc, (0, 3, 1, 2))           # back to NCHW f32


# ---------------- deterministic parameter init (torch-style) ----------------

def _xavier_uniform(key, shape, fan_in, fan_out, gain):
    bound = gain * np.sqrt(6.0 / (fan_in + fan_out))
    return jax.random.uniform(key, shape, jnp.float32, -bound, bound)


def init_resblock_params(key, in_ch, out_ch):
    k = jax.random.split(key, 6)
    relu_gain = float(np.sqrt(2.0))     # calculate_gain('relu')
    fi1 = in_ch * 9
    w1 = _xavier_uniform(k[0], (3, 3, in_ch, out_ch), fi1, out_ch * 9, relu_gain)
    b1 = jax.random.uniform(k[1], (out_ch,), jnp.float32,
                            -1.0 / np.sqrt(fi1), 1.0 / np.sqrt(fi1))
    fi2 = out_ch * 9
    w2 = _xavier_uniform(k[2], (3, 3, out_ch, out_ch), fi2, out_ch * 9, 1.0)
    b2 = jax.random.uniform(k[3], (out_ch,), jnp.float32,
                            -1.0 / np.sqrt(fi2), 1.0 / np.sqrt(fi2))
    ws = _xavier_uniform(k[4], (in_ch, out_ch), in_ch, out_ch, 1.0)
    bs = jax.random.uniform(k[5], (out_ch,), jnp.float32,
                            -1.0 / np.sqrt(in_ch), 1.0 / np.sqrt(in_ch))
    return {"w1": w1, "b1": b1, "w2": w2, "b2": b2, "ws": ws, "bs": bs,
            "gamma": jnp.ones((out_ch,), jnp.float32),
            "beta": jnp.zeros((out_ch,), jnp.float32)}


def pack_params(params, lambd=1.0, lane=LANE):
    """Pack logical params into the kernel layout (lane-padded, lambd folded)."""
    w1, w2, ws = params["w1"], params["w2"], params["ws"]
    Cin, Cout = w1.shape[2], w1.shape[3]
    C = _round_up(Cout, lane)

    w1p = jnp.zeros((3, 3, Cin, C), jnp.float32).at[..., :Cout].set(w1)
    # lambd folded into conv2 weights; bs + lambd*b2 folded into one bias.
    w2p = jnp.zeros((3, 3, C, C), jnp.float32).at[:, :, :Cout, :Cout].set(w2 * lambd)
    wsp = jnp.zeros((Cin, C), jnp.float32).at[:, :Cout].set(ws)
    bout = jnp.zeros((1, C), jnp.float32).at[0, :Cout].set(
        params["bs"] + lambd * params["b2"])

    # NOTE: conv1's bias cancels exactly under training-mode BatchNorm, so it
    # is dropped.  Padded gamma/beta are 0 so padded channels stay exactly 0.
    return {
        "w1i": w1p.reshape(9 * Cin, C).astype(jnp.bfloat16),
        "w2i": w2p.reshape(9, C, C).astype(jnp.bfloat16),
        "ws": wsp.astype(jnp.bfloat16),
        "bout": bout,
        "gamma": jnp.zeros((C,), jnp.float32).at[:Cout].set(params["gamma"]),
        "beta": jnp.zeros((C,), jnp.float32).at[:Cout].set(params["beta"]),
        "cout": Cout,
    }


# ----------------------- pure-JAX reference (for check) ---------------------
# Mirrors the kernel's precision policy (bf16 MXU operands, f32 accumulation,
# bf16 activation into conv2, f32 BN statistics).

def _conv_ref(x_nhwc, w_hwio, b):
    y = lax.conv_general_dilated(
        x_nhwc.astype(jnp.bfloat16), w_hwio.astype(jnp.bfloat16), (1, 1), "SAME",
        dimension_numbers=("NHWC", "HWIO", "NHWC"),
        preferred_element_type=jnp.float32)
    return y + b.reshape(1, 1, 1, -1)


def resblock_ref(x_nchw, params, lambd=1.0):
    x = jnp.transpose(x_nchw, (0, 2, 3, 1)).astype(jnp.float32)
    Cin, Cout = params["ws"].shape
    y1 = _conv_ref(x, params["w1"], params["b1"])
    mean = jnp.mean(y1, axis=(0, 1, 2))
    var = jnp.mean(jnp.square(y1 - mean), axis=(0, 1, 2))     # biased variance
    scale = params["gamma"] * lax.rsqrt(var + EPS)
    a = jnp.maximum((y1 - mean) * scale + params["beta"], 0.0)
    y2 = _conv_ref(a, params["w2"], params["b2"])
    skip = _conv_ref(x, params["ws"].reshape(1, 1, Cin, Cout), params["bs"])
    return jnp.transpose(skip + lambd * y2, (0, 3, 1, 2))


if __name__ == "__main__":
    key = jax.random.PRNGKey(0)
    k_x, k_p = jax.random.split(key)

    N, Cin, H, W = 2, 4, 16, 16
    Cout = 8                    # input_dim != output_dim -> 1x1-conv skip path
    lambd = 1.0

    x = jax.random.normal(k_x, (N, Cin, H, W), jnp.float32)
    params = init_resblock_params(k_p, Cin, Cout)
    packed = pack_params(params, lambd=lambd)

    out = jax.block_until_ready(resblock_forward(x, packed))
    ref = jax.block_until_ready(resblock_ref(x, params, lambd))

    assert out.shape == (N, Cout, H, W), out.shape
    np.testing.assert_allclose(np.asarray(out), np.asarray(ref),
                               rtol=3e-3, atol=3e-3)
    print("KERNEL_OK")
</pallas_src>

<mosaic_0001>
module attributes {stable_mosaic.version = 11 : i64} {
  func.func @_conv1_stats_kernel(%arg0: i32, %arg1: i32, %arg2: memref<1x16x16x36xbf16, #tpu.memory_space<vmem>>, %arg3: memref<36x128xbf16, #tpu.memory_space<vmem>>, %arg4: memref<1x1x2x128xf32, #tpu.memory_space<vmem>>) attributes {dimension_semantics = [#tpu.dimension_semantics<parallel>, #tpu.dimension_semantics<parallel>], iteration_bounds = array<i64: 2, 1>, scalar_prefetch = 0 : i64, scratch_operands = 0 : i64, tpu.core_type = #tpu.core_type<tc>, window_params = [{transform_indices = @transform_0, window_bounds = array<i64: 1, 16, 16, 36>}, {pipeline_mode = #tpu.pipeline_mode<synchronous>, transform_indices = @transform_1, window_bounds = array<i64: 36, 128>}, {transform_indices = @transform_2, window_bounds = array<i64: 1, 1, 2, 128>}]} {
    %c0 = arith.constant 0 : index
    %c0_0 = arith.constant 0 : index
    %c0_1 = arith.constant 0 : index
    %c0_2 = arith.constant 0 : index
    %0 = vector.load %arg2[%c0, %c0_0, %c0_1, %c0_2] : memref<1x16x16x36xbf16, #tpu.memory_space<vmem>>, vector<1x16x16x36xbf16>
    %1 = vector.shape_cast %0 : vector<1x16x16x36xbf16> to vector<16x16x36xbf16>
    %2 = vector.shape_cast %1 : vector<16x16x36xbf16> to vector<256x36xbf16>
    %c0_3 = arith.constant 0 : index
    %c0_4 = arith.constant 0 : index
    %3 = vector.load %arg3[%c0_3, %c0_4] : memref<36x128xbf16, #tpu.memory_space<vmem>>, vector<36x128xbf16>
    %cst = arith.constant dense<0.000000e+00> : vector<256x128xf32>
    %4 = tpu.matmul %2, %3, %cst {dimension_numbers = #tpu.dot_dimension_numbers<[1], [0], [0], [1], [0, 0, 1, 1], [], []>} : vector<256x36xbf16>, vector<36x128xbf16>, vector<256x128xf32> -> vector<256x128xf32>
    %cst_5 = arith.constant dense<0.000000e+00> : vector<128xf32>
    %5 = vector.multi_reduction <add>, %4, %cst_5 [0] : vector<256x128xf32> to vector<128xf32>
    %6 = vector.shape_cast %5 : vector<128xf32> to vector<1x128xf32>
    %7 = arith.mulf %4, %4 : vector<256x128xf32>
    %cst_6 = arith.constant dense<0.000000e+00> : vector<128xf32>
    %8 = vector.multi_reduction <add>, %7, %cst_6 [0] : vector<256x128xf32> to vector<128xf32>
    %9 = vector.shape_cast %8 : vector<128xf32> to vector<1x128xf32>
    %10 = tpu.concatenate %6, %9 in 0 : vector<1x128xf32>, vector<1x128xf32> -> vector<2x128xf32>
    %11 = vector.shape_cast %10 : vector<2x128xf32> to vector<1x1x2x128xf32>
    %c0_7 = arith.constant 0 : index
    %c0_8 = arith.constant 0 : index
    %c0_9 = arith.constant 0 : index
    %c0_10 = arith.constant 0 : index
    %12 = vector.load %arg4[%c0_7, %c0_8, %c0_9, %c0_10] : memref<1x1x2x128xf32, #tpu.memory_space<vmem>>, vector<1x1x2x128xf32>
    tpu.vector_store %arg4[%c0_7, %c0_8, %c0_9, %c0_10], %11 {strides = array<i32>} : memref<1x1x2x128xf32, #tpu.memory_space<vmem>>, vector<1x1x2x128xf32>,
    return
  }
  func.func @transform_0(%arg0: i32, %arg1: i32) -> (i32, i32, i32, i32) {
    %c0_i32 = arith.constant 0 : i32
    %c0_i32_0 = arith.constant 0 : i32
    %c0_i32_1 = arith.constant 0 : i32
    return %arg0, %arg1, %c0_i32, %c0_i32_0 : i32, i32, i32, i32
  }
  func.func @transform_1(%arg0: i32, %arg1: i32) -> (i32, i32) {
    %c0_i32 = arith.constant 0 : i32
    %c0_i32_0 = arith.constant 0 : i32
    %c0_i32_1 = arith.constant 0 : i32
    return %c0_i32, %c0_i32_0 : i32, i32
  }
  func.func @transform_2(%arg0: i32, %arg1: i32) -> (i32, i32, i32, i32) {
    %c0_i32 = arith.constant 0 : i32
    %c0_i32_0 = arith.constant 0 : i32
    %c0_i32_1 = arith.constant 0 : i32
    return %arg0, %arg1, %c0_i32, %c0_i32_0 : i32, i32, i32, i32
  }
}

</mosaic_0001>

<bundles_post_ra>
// kernel: tpu_custom_call.1
= control target key start
LH: loop header
LB: loop body
LE: loop exit
PB: predicated region body
PF: predicated region fallthrough
CT: control target
= control target key end

     0   :  { %7 = vsyncpa [#allocation3], 0  ;;  %s1445_s0 = inlined_call_operand.hbm [shape: bf16[2,16,16,36], index: 0, kind: input, shape index: {}]   ;;  %s1446_s1 = inlined_call_operand.hbm [shape: bf16[36,128], index: 1, kind: input, shape index: {}]   ;;  %s1447_s2 = inlined_call_operand.hbm [shape: f32[2,1,2,128], index: 2, kind: output, shape index: {}]  }
   0x1   :  { %9 = vsyncpa [#allocation3 + $0x1], 0 }
   0x2   :  { %10 = vsyncpa [#allocation6], 0 }
   0x3   :  { %11 = vsyncpa [#allocation4], 0 }
   0x4   :  { %13 = vsyncpa [#allocation4 + $0x1], 0  ;;  %s1137_s9 = smov 0   ;;  %s1139_s10 = smov 0  }
   0x5   :  { %s1141_s11 = smov 0   ;;  %s1143_s12 = smov 0  }
   0x6   :  { %s1145_s13 = smov 0   ;;  %s1147_s14 = smov 0  }
   0x7 LB: > { %s760_s15 = sadd.s32 4294967295, %s1115_s14   ;;  %s761_s16 = sadd.s32 4294967294, %s1115_s14   ;;  %s1115_s14 = sphi %s1147_s14, %s19_s14   ;;  %s1111_s13 = sphi %s1145_s13, %s1471_s13   ;;  %s1107_s12 = sphi %s1143_s12, %s1470_s12   ;;  %s1103_s11 = sphi %s1141_s11, %s1469_s11   ;;  %s1099_s10 = sphi %s1139_s10, %s1468_s10   ;;  %s1095_s9 = sphi %s1137_s9, %s1467_s9  }
   0x8   : > { %p53_p0 = scmp.ne.s32.totalorder %s1099_s10, %s1095_s9  ;;  %p1171_p1 = scmp.eq.s32.totalorder %s760_s15, 0 }
   0x9   : > { %p1175_p2 = scmp.eq.s32.totalorder %s760_s15, 1  ;;  %p106_p3 = scmp.eq.s32.totalorder %s761_s16, 1 }
   0xa   : > { %s1452_s17 = scalar_select %p1171_p1, 1, 0 }
   0xb   : > { %s1453_s18 = scalar_select %p1175_p2, 1, 0 }
   0xc   : > { %p1181_p4 = por %p1171_p1, %p53_p0  ;;  %p762_p5 = scmp.ge.s32.totalorder %s1115_s14, 1 }
   0xd   : > { %p1186_p6 = por %p106_p3, %p53_p0  ;;  %p113_p7 = scmp.lt.s32.totalorder %s1115_s14, 3 }
   0xe   : > { %s1454_s19 = scalar_select %p1181_p4, 1, 0 }
   0xf   : > { %s1455_s20 = scalar_select %p1186_p6, 1, 0 }
  0x10   : > { %p1191_p8 = pnand %p762_p5, %p113_p7  ;;  %s1117_s22 = smov [#allocation5]  }
  0x11   : > { %s125_s23 = sshll.u32 %s1117_s22, 4  ;;  %s31_s25 = sadd.s32 1, %s1111_s13  ;;  %s126_s23 = int_to_ptr.vmem [resolvable:$true] %s125_s23 }
  0x12   : > { %s1456_s21 = scalar_select %p1191_p8, 1, 0 }
  0x13   : > { %p885_p9 = pneg %p1191_p8  ;;  %s971_s28 = scalar_lea.hbm %s1446_s1, 320 }
  0x14   : > { %p972_p12 = scmp.ne.s32.totalorder %s1446_s1, %s971_s28  ;;  %p978_p5 = scmp.lt.u32.totalorder %s971_s28, %s1446_s1 }
  0x15   : > { %p1200_p11 = pnand %p885_p9, %p1171_p1 }
  0x17   : > { %p973_p13 = pneg %p1200_p11 }
  0x19   : > { %p974_p0 = pnand %p973_p13, %p972_p12 }
  0x1b   : > { %p975_p3 = pneg %p974_p0 }
  0x1d   : > { %p980_p7 = pnand %p978_p5, %p975_p3 }
  0x1f   : > { %983 = shalt.err (!%p980_p7)
}
  0x20   : > { %s984_s5 = scalar_lea.vmem %s126_s23, 320  ;;  %p992_p1 = scmp.lt.s32.totalorder %s126_s23, %s126_s23 }
  0x21   : > { %p985_p9 = scmp.ne.s32.totalorder %s126_s23, %s984_s5  ;;  %p993_p4 = scmp.lt.s32.totalorder %s984_s5, %s984_s5 }
  0x23   : > { %p987_p10 = pnand %p985_p9, %p973_p13  ;;  %p994_p8 = por %p993_p4, %p992_p1 }
  0x25   : > { %p988_p6 = pneg %p987_p10 }
  0x27   : > { %p995_p2 = pnand %p994_p8, %p988_p6 }
  0x29   : > { %998 = shalt.err (!%p995_p2)
}
  0x2a   : > { %s1118_s6 = smov 64   ;;  %s1119_s7 = smov 4  }
  0x2b   : > { %888 = dma.hbm_to_vmem [thread:$0]  (!%p1200_p11), %s1446_s1, 320, %s126_s23, [#allocation6], %s1118_s6, %s1118_s6, %s1119_s7  }
  0x2c   : > { %p33_p1 = scmp.ge.s32.totalorder %s31_s25, 2  ;;  %s40_s16 = sadd.s32 1, %s1103_s11 }
  0x2d   : > { %p47_p2 = scmp.ne.s32.totalorder %s1103_s11, %s1099_s10  ;;  %p48_p4 = scmp.eq.s32.totalorder %s1115_s14, 0 }
  0x2e   : > { %s1473_s25 = smov (%p33_p1, %s31_s25), 0  ;;  %p1459_p8 = scmp.ne.s32.totalorder %s1453_s18, 0 }
  0x2f   : > { %p1230_p6 = por %p48_p4, %p47_p2  ;;  %s35_s26 = ssub.s32 %s1111_s13, %s1473_s25 }
  0x30   : > { %p1236_p10 = por %p1459_p8, %p47_p2  ;;  %p898_p12 = scmp.lt.s32.totalorder %s1115_s14, 2 }
  0x31   : > { %p38_p11 = scmp.eq.s32.totalorder %s35_s26, 0  ;;  %s139_s23 = sand.u32 1, %s1103_s11  }
  0x32   : > { %s765_s27 = sshll.u32 %s139_s23, 7  ;;  %s811_s29 = sshll.u32 %s1111_s13, 11 }
  0x33   : > { %s1245_s28 = scalar_select %p38_p11, %s1103_s11, %s40_s16  }
  0x34   : > { %s1251_s4 = scalar_lea.hbm %s1445_s0, %s811_s29  ;;  %s143_s18 = scalar_lea.vmem [#allocation2], %s765_s27 }
  0x35   : > { %s153_s5 = sshll.u32 %s143_s18, 4  ;;  %p1257_p13 = pnand %p898_p12, %p1230_p6  ;;  %s1253_s5 = int_to_ptr.vmem [resolvable:$true] %s153_s5 }
  0x36   : > { %s1261_s15 = scalar_lea.sflag [#allocation3], %s139_s23  ;;  %s999_s16 = scalar_lea.hbm %s1251_s4, 2048 }
  0x37   : > { %p1000_p0 = scmp.ne.s32.totalorder %s1251_s4, %s999_s16  ;;  %p1001_p3 = pneg %p1257_p13 }
  0x38   : > { %s1004_s22 = scalar_lea.hbm %s1445_s0, 4096  ;;  %p1005_p9 = scmp.lt.u32.totalorder %s1251_s4, %s1445_s0 }
  0x39   : > { %p1002_p5 = pnand %p1001_p3, %p1000_p0  ;;  %p1006_p1 = scmp.lt.u32.totalorder %s1004_s22, %s999_s16 }
  0x3a   : > { %p1008_p4 = scmp.lt.u32.totalorder %s999_s16, %s1251_s4 }
  0x3b   : > { %p1003_p7 = pneg %p1002_p5  ;;  %p1007_p2 = por %p1006_p1, %p1005_p9 }
  0x3d   : > { %p1009_p6 = por %p1008_p4, %p1007_p2 }
  0x3f   : > { %p1010_p8 = pnand %p1009_p6, %p1003_p7 }
  0x41   : > { %1013 = shalt.err (!%p1010_p8)
}
  0x42   : > { %s1014_s23 = scalar_lea.vmem %s1253_s5, 2048  ;;  %s1120_s3 = smov [#allocation2]  }
  0x43   : > { %p1015_p12 = scmp.ne.s32.totalorder %s1253_s5, %s1014_s23  ;;  %s1019_s18 = sshll.u32 %s1120_s3, 4  ;;  %s1020_s18 = int_to_ptr.vmem [resolvable:$false] %s1019_s18 }
  0x44   : > { %s1021_s26 = scalar_lea.vmem %s1020_s18, 4096  ;;  %p1022_p5 = scmp.lt.s32.totalorder %s1253_s5, %s1020_s18 }
  0x45   : > { %p1017_p11 = pnand %p1015_p12, %p1001_p3  ;;  %p1023_p9 = scmp.lt.s32.totalorder %s1021_s26, %s1014_s23 }
  0x47   : > { %p1018_p0 = pneg %p1017_p11  ;;  %p1024_p1 = por %p1023_p9, %p1022_p5 }
  0x49   : > { %p1025_p2 = pnand %p1024_p1, %p1018_p0 }
  0x4b   : > { %1028 = shalt.err (!%p1025_p2)
}
  0x4c   : > { %892 = dma.hbm_to_vmem [thread:$0]  (!%p1257_p13), %s1251_s4, 2048, %s1253_s5, %s1261_s15, %s1118_s6, %s1118_s6, %s1119_s7  }
  0x4d   : > { %p1462_p3 = scmp.ne.s32.totalorder %s1456_s21, 0 }
  0x4e   : > { %s1295_s16 = sand.u32 (!%p1462_p3), 1, %s1099_s10   ;;  %p1463_p7 = scmp.ne.s32.totalorder (!%p1462_p3), %s1454_s19, 0 }
  0x4f   : > { %165 = sbr.rel (%p1462_p3) target bundleno = 409 (0x199), region = 28  ;;  %s769_s27 = sshll.u32 (!%p1462_p3), %s1295_s16, 7 }
  0x50   : > { %s168_s22 = scalar_lea.sflag (!%p1462_p3), [#allocation3], %s1295_s16  ;;  %s1299_s29 = scalar_lea.vmem (!%p1462_p3), [#allocation2], %s769_s27 }
  0x56   : > { %1082 = dma.done.wait (%p1463_p7), %s168_s22, 2048  }
  0x57   : > { %1084 = vsyncadd (%p1463_p7), %s168_s22, 4294965248  ;;  %p1464_p13 = scmp.ne.s32.totalorder %s1452_s17, 0 }
  0x59   : > { %1086 = dma.done.wait (%p1464_p13), [#allocation6], 320  }
  0x5a   : > { %1088 = vsyncadd (%p1464_p13), [#allocation6], 4294966976  ;;  %v952_v0 = vld [vmem:[#allocation5] sm:$0xff]   ;;  %v953_v1 = vld [vmem:[#allocation5 + $0x8] sm:$0xff]   ;;  %vm330_vm0 = vcmask 293888   ;;  %vm379_vm1 = vcmask 1041408  }
  0x5b   : > { %831 = vmatprep.subr.bf16.mxu0 %v952_v0  ;;  %v954_v2 = vld [vmem:[#allocation5 + $0x10] ss:$0 sps:$4 sm:$0x33]   ;;  %v955_v3 = vld [vmem:[%s1299_s29] sm:$0xff]   ;;  %869 = vmatprep.subr.bf16.mxu1 %v952_v0  ;;  %v956_v5 = vld [vmem:[%s1299_s29 + $0x8] sm:$0xff]   ;;  %s771_s17 = sshll.u32 %s1295_s16, 1 }
  0x5c   : > { %832 = vmatpush3.bf16.msra.mxu0 %v952_v0  ;;  %872 = vmatpush3.bf16.msra.mxu1 %v952_v0  ;;  %v381_v4 = vsel %vm379_vm1, %v954_v2, 0  ;;  %v957_v6 = vld [vmem:[%s1299_s29 + $0x10] sm:$0xff]   ;;  %v963_v7 = vld [vmem:[%s1299_s29 + $0x40] sm:$0xff]   ;;  %v964_v8 = vld [vmem:[%s1299_s29 + $0x48] sm:$0xff]   ;;  %s808_s19 = sshll.u32 %s1107_s12, 5  ;;  %s195_s21 = scalar_lea.vmem [#allocation7], %s771_s17 }
  0x5d   : > { %833 = vmatprep.subr.bf16.mxu0 %v953_v1  ;;  %837 = vmatprep.mubr.msk.bf16.mxu0 %vm330_vm0, %v955_v3  ;;  %v965_v9 = vld [vmem:[%s1299_s29 + $0x50] sm:$0xff]   ;;  %v958_v10 = vld [vmem:[%s1299_s29 + $0x18] sm:$0xff]   ;;  %v959_v12 = vld [vmem:[%s1299_s29 + $0x20] sm:$0xff]   ;;  %s668_s6 = sshll.u32 %s195_s21, 4  ;;  %vm650_vm2 = vcmask 1040384   ;;  %s1396_s5 = scalar_lea.hbm %s1447_s2, %s808_s19  ;;  %s1398_s6 = int_to_ptr.vmem [resolvable:$true] %s668_s6 }
  0x5e   : > { %870 = vmatprep.subr.bf16.mxu1 %v953_v1  ;;  %853 = vmatprep.mubr.msk.bf16.mxu1 %vm330_vm0, %v963_v7  ;;  %v966_v11 = vld [vmem:[%s1299_s29 + $0x58] sm:$0xff]   ;;  %v967_v13 = vld [vmem:[%s1299_s29 + $0x60] sm:$0xff]   ;;  %v960_v14 = vld [vmem:[%s1299_s29 + $0x28] sm:$0xff]   ;;  %s654_s8 = scalar_lea.sflag [#allocation4], %s1295_s16  ;;  %s1029_s15 = scalar_lea.vmem %s1398_s6, 32 }
  0x5f   : > { %v968_v15 = vld [vmem:[%s1299_s29 + $0x68] sm:$0xff]   ;;  %v961_v16 = vld [vmem:[%s1299_s29 + $0x30] sm:$0xff]   ;;  %v962_v18 = vld [vmem:[%s1299_s29 + $0x38] sm:$0xff]   ;;  %p1030_p4 = scmp.ne.s32.totalorder %s1398_s6, %s1029_s15  ;;  %s1121_s12 = smov [#allocation7]  }
  0x60   : > { %834 = vmatpush3.bf16.msra.mxu0 %v953_v1  ;;  %873 = vmatpush3.bf16.msra.mxu1 %v953_v1  ;;  %v969_v17 = vld [vmem:[%s1299_s29 + $0x70] sm:$0xff]   ;;  %v970_v19 = vld [vmem:[%s1299_s29 + $0x78] sm:$0xff]   ;;  %s1033_s30 = sshll.u32 %s1121_s12, 4  ;;  %s1034_s30 = int_to_ptr.vmem [resolvable:$false] %s1033_s30 }
  0x61   : > { %875 = vmatprep.subr.msk.bf16.mxu0 %vm379_vm1, %v954_v2  ;;  %876 = vmatprep.subr.msk.bf16.mxu1 %vm379_vm1, %v954_v2  ;;  %p1031_p6 = pnand %p1030_p4, %p1236_p10  ;;  %s1035_s23 = scalar_lea.vmem %s1034_s30, 64 }
  0x62   : > { %p1036_p12 = scmp.lt.s32.totalorder %s1398_s6, %s1034_s30  ;;  %p1037_p11 = scmp.lt.s32.totalorder %s1035_s23, %s1029_s15 }
  0x63   : > { %p1032_p8 = pneg %p1031_p6 }
  0x64   : > { %836 = vmatpush3.bf16.msra.mxu0 %v381_v4  ;;  %874 = vmatpush3.bf16.msra.mxu1 %v381_v4  ;;  %p1038_p0 = por %p1037_p11, %p1036_p12 }
  0x66   : > { %p1039_p5 = pnand %p1038_p0, %p1032_p8 }
  0x67   : > { %838 = vmatmul.mubr.msk.bf16.vlgmr.msra.gmra.mrb[0].mxu0 %vm330_vm0, %v956_v5  ;;  %854 = vmatmul.mubr.msk.bf16.vlgmr.msra.gmra.mrb[0].mxu1 %vm330_vm0, %v964_v8 }
  0x68   : > { %841 = vmatprep.mubr.msk.bf16.mxu0 %vm330_vm0, %v957_v6  ;;  %857 = vmatprep.mubr.msk.bf16.mxu1 %vm330_vm0, %v965_v9 }
  0x6f   : > { %842 = vmatmul.mubr.msk.bf16.gmra.mrb[4].mxu0 %vm330_vm0, %v958_v10  ;;  %858 = vmatmul.mubr.msk.bf16.gmra.mrb[4].mxu1 %vm330_vm0, %v966_v11 }
  0x70   : > { %845 = vmatprep.mubr.msk.bf16.mxu0 %vm330_vm0, %v959_v12  ;;  %861 = vmatprep.mubr.msk.bf16.mxu1 %vm330_vm0, %v967_v13 }
  0x77   : > { %846 = vmatmul.mubr.msk.bf16.gmra.mrb[8].mxu0 %vm330_vm0, %v960_v14  ;;  %862 = vmatmul.mubr.msk.bf16.gmra.mrb[8].mxu1 %vm330_vm0, %v968_v15 }
  0x78   : > { %849 = vmatprep.mubr.msk.bf16.mxu0 %vm330_vm0, %v961_v16  ;;  %865 = vmatprep.mubr.msk.bf16.mxu1 %vm330_vm0, %v969_v17 }
  0x7f   : > { %850 = vmatmul.mubr.msk.bf16.gmra.mrb[12].mxu0 %vm330_vm0, %v962_v18  ;;  %866 = vmatmul.mubr.msk.bf16.gmra.mrb[12].mxu1 %vm330_vm0, %v970_v19 }
 0x13a   : > { %v839_v20 = vpop.f32.mrb[0].mxu0  ;;  %v1341_v21 = vpop.f32.mrb[0].mxu1 }
 0x13b   : > { %v417_v22 = vpop.f32.mrb[1].mxu0  ;;  %v1343_v23 = vpop.f32.mrb[1].mxu1  ;;  %v583_v31 = vmul.f32 %v839_v20, %v839_v20 }
 0x13c   : > { %v840_v24 = vpop.f32.mrb[2].mxu0  ;;  %v1345_v25 = vpop.f32.mrb[2].mxu1  ;;  %v581_v28 = vmul.f32 %v417_v22, %v417_v22 }
 0x13d   : > { %v420_v26 = vpop.f32.mrb[3].mxu0  ;;  %v1347_v27 = vpop.f32.mrb[3].mxu1  ;;  %v584_v34 = vmul.f32 %v840_v24, %v840_v24 }
 0x13e   : > { %v544_v29 = vadd.f32 %v420_v26, %v417_v22  ;;  %v582_v30 = vmul.f32 %v420_v26, %v420_v26 }
 0x140   : > { %v545_v32 = vadd.f32 %v839_v20, %v544_v29  ;;  %v613_v33 = vadd.f32 %v582_v30, %v581_v28 }
 0x142   : > { %v614_v35 = vadd.f32 %v613_v33, %v583_v31  ;;  %v843_v36 = vpop.f32.mrb[4].mxu0  ;;  %v546_v37 = vadd.f32 %v840_v24, %v545_v32  ;;  %v1349_v38 = vpop.f32.mrb[4].mxu1 }
 0x143   : > { %v433_v39 = vpop.f32.mrb[5].mxu0  ;;  %v1351_v40 = vpop.f32.mrb[5].mxu1  ;;  %v587_v51 = vmul.f32 %v843_v36, %v843_v36 }
 0x144   : > { %v547_v41 = vadd.f32 %v546_v37, %v433_v39  ;;  %v585_v42 = vmul.f32 %v433_v39, %v433_v39  ;;  %v615_v43 = vadd.f32 %v614_v35, %v584_v34  ;;  %v844_v44 = vpop.f32.mrb[6].mxu0  ;;  %v1353_v45 = vpop.f32.mrb[6].mxu1  ;;  %v597_v37 = vmul.f32 %v1343_v23, %v1343_v23 }
 0x145   : > { %v436_v46 = vpop.f32.mrb[7].mxu0  ;;  %v1355_v47 = vpop.f32.mrb[7].mxu1  ;;  %v588_v54 = vmul.f32 %v844_v44, %v844_v44 }
 0x146   : > { %v616_v48 = vadd.f32 %v615_v43, %v585_v42  ;;  %v548_v49 = vadd.f32 %v547_v41, %v436_v46  ;;  %v586_v50 = vmul.f32 %v436_v46, %v436_v46  ;;  %v599_v46 = vmul.f32 %v1341_v21, %v1341_v21 }
 0x148   : > { %v549_v52 = vadd.f32 %v843_v36, %v548_v49  ;;  %v617_v53 = vadd.f32 %v616_v48, %v586_v50  ;;  %v600_v50 = vmul.f32 %v1345_v25, %v1345_v25 }
 0x14a   : > { %v618_v55 = vadd.f32 %v617_v53, %v587_v51  ;;  %v847_v56 = vpop.f32.mrb[8].mxu0  ;;  %v550_v57 = vadd.f32 %v844_v44, %v549_v52  ;;  %v1357_v58 = vpop.f32.mrb[8].mxu1  ;;  %v598_v44 = vmul.f32 %v1347_v27, %v1347_v27 }
 0x14b   : > { %v449_v59 = vpop.f32.mrb[9].mxu0  ;;  %v513_v60 = vpop.f32.mrb[9].mxu1  ;;  %v591_v7 = vmul.f32 %v847_v56, %v847_v56 }
 0x14c   : > { %v551_v61 = vadd.f32 %v550_v57, %v449_v59  ;;  %v589_v62 = vmul.f32 %v449_v59, %v449_v59  ;;  %v619_v63 = vadd.f32 %v618_v55, %v588_v54  ;;  %v848_v0 = vpop.f32.mrb[10].mxu0  ;;  %v1359_v1 = vpop.f32.mrb[10].mxu1 }
 0x14d   : > { %v452_v2 = vpop.f32.mrb[11].mxu0  ;;  %v516_v3 = vpop.f32.mrb[11].mxu1  ;;  %v592_v10 = vmul.f32 %v848_v0, %v848_v0 }
 0x14e   : > { %v620_v4 = vadd.f32 %v619_v63, %v589_v62  ;;  %v552_v5 = vadd.f32 %v551_v61, %v452_v2  ;;  %v590_v6 = vmul.f32 %v452_v2, %v452_v2 }
 0x150   : > { %v553_v8 = vadd.f32 %v847_v56, %v552_v5  ;;  %v621_v9 = vadd.f32 %v620_v4, %v590_v6  ;;  %v602_v56 = vmul.f32 %v1355_v47, %v1355_v47  ;;  %v606_v5 = vmul.f32 %v516_v3, %v516_v3 }
 0x152   : > { %v622_v11 = vadd.f32 %v621_v9, %v591_v7  ;;  %v851_v12 = vpop.f32.mrb[12].mxu0  ;;  %v554_v13 = vadd.f32 %v848_v0, %v553_v8  ;;  %v867_v14 = vpop.f32.mrb[12].mxu1 }
 0x153   : > { %v465_v15 = vpop.f32.mrb[13].mxu0  ;;  %v529_v16 = vpop.f32.mrb[13].mxu1  ;;  %v595_v31 = vmul.f32 %v851_v12, %v851_v12 }
 0x154   : > { %v555_v17 = vadd.f32 %v554_v13, %v465_v15  ;;  %v593_v18 = vmul.f32 %v465_v15, %v465_v15  ;;  %v623_v19 = vadd.f32 %v622_v11, %v592_v10  ;;  %v852_v20 = vpop.f32.mrb[14].mxu0  ;;  %v868_v22 = vpop.f32.mrb[14].mxu1  ;;  %v609_v10 = vmul.f32 %v529_v16, %v529_v16 }
 0x155   : > { %v468_v24 = vpop.f32.mrb[15].mxu0  ;;  %v532_v26 = vpop.f32.mrb[15].mxu1  ;;  %v596_v34 = vmul.f32 %v852_v20, %v852_v20 }
 0x156   : > { %v624_v28 = vadd.f32 %v623_v19, %v593_v18  ;;  %v556_v29 = vadd.f32 %v555_v17, %v468_v24  ;;  %v594_v30 = vmul.f32 %v468_v24, %v468_v24  ;;  %v610_v13 = vmul.f32 %v532_v26, %v532_v26 }
 0x157   : > { %v612_v18 = vmul.f32 %v868_v22, %v868_v22 }
 0x158   : > { %v557_v32 = vadd.f32 %v851_v12, %v556_v29  ;;  %v625_v33 = vadd.f32 %v624_v28, %v594_v30 }
 0x15a   : > { %v626_v35 = vadd.f32 %v625_v33, %v595_v31  ;;  %v558_v36 = vadd.f32 %v852_v20, %v557_v32 }
 0x15c   : > { %v559_v39 = vadd.f32 %v558_v36, %v1343_v23  ;;  %v627_v41 = vadd.f32 %v626_v35, %v596_v34  ;;  %v601_v23 = vmul.f32 %v1351_v40, %v1351_v40 }
 0x15e   : > { %v628_v42 = vadd.f32 %v627_v41, %v597_v37  ;;  %v560_v43 = vadd.f32 %v559_v39, %v1347_v27 }
 0x160   : > { %v561_v48 = vadd.f32 %v1341_v21, %v560_v43  ;;  %v629_v49 = vadd.f32 %v628_v42, %v598_v44  ;;  %v603_v21 = vmul.f32 %v1349_v38, %v1349_v38 }
 0x162   : > { %v630_v51 = vadd.f32 %v629_v49, %v599_v46  ;;  %v562_v52 = vadd.f32 %v1345_v25, %v561_v48  ;;  %v604_v25 = vmul.f32 %v1353_v45, %v1353_v45 }
 0x164   : > { %v563_v53 = vadd.f32 %v562_v52, %v1351_v40  ;;  %v631_v54 = vadd.f32 %v630_v51, %v600_v50  ;;  %v605_v40 = vmul.f32 %v513_v60, %v513_v60 }
 0x166   : > { %v632_v55 = vadd.f32 %v631_v54, %v601_v23  ;;  %v564_v27 = vadd.f32 %v563_v53, %v1355_v47  ;;  %v607_v47 = vmul.f32 %v1357_v58, %v1357_v58 }
 0x168   : > { %v565_v57 = vadd.f32 %v1349_v38, %v564_v27  ;;  %v633_v59 = vadd.f32 %v632_v55, %v602_v56  ;;  %v608_v38 = vmul.f32 %v1359_v1, %v1359_v1 }
 0x16a   : > { %v634_v61 = vadd.f32 %v633_v59, %v603_v21  ;;  %v566_v62 = vadd.f32 %v1353_v45, %v565_v57 }
 0x16c   : > { %v567_v63 = vadd.f32 %v566_v62, %v513_v60  ;;  %v635_v0 = vadd.f32 %v634_v61, %v604_v25 }
 0x16e   : > { %v636_v2 = vadd.f32 %v635_v0, %v605_v40  ;;  %v568_v4 = vadd.f32 %v567_v63, %v516_v3  ;;  %v611_v3 = vmul.f32 %v867_v14, %v867_v14 }
 0x170   : > { %v569_v6 = vadd.f32 %v1357_v58, %v568_v4  ;;  %v637_v7 = vadd.f32 %v636_v2, %v606_v5 }
 0x172   : > { %v638_v8 = vadd.f32 %v637_v7, %v607_v47  ;;  %v570_v9 = vadd.f32 %v1359_v1, %v569_v6 }
 0x174   : > { %v571_v45 = vadd.f32 %v570_v9, %v529_v16  ;;  %v639_v11 = vadd.f32 %v638_v8, %v608_v38 }
 0x176   : > { %v640_v60 = vadd.f32 %v639_v11, %v609_v10  ;;  %v572_v12 = vadd.f32 %v571_v45, %v532_v26 }
 0x178   : > { %v573_v15 = vadd.f32 %v867_v14, %v572_v12  ;;  %v641_v17 = vadd.f32 %v640_v60, %v610_v13 }
 0x17a   : > { %v574_v58 = vadd.f32 %v868_v22, %v573_v15  ;;  %v642_v19 = vadd.f32 %v641_v17, %v611_v3 }
 0x17c   : > { %v575_v20 = vrot.slane %v574_v58, 4  ;;  %v643_v24 = vadd.f32 %v642_v19, %v612_v18 }
 0x17e   : > { %v576_v28 = vadd.f32 %v575_v20, %v574_v58  ;;  %v644_v29 = vrot.slane %v643_v24, 4 }
 0x180   : > { %v577_v30 = vrot.slane %v576_v28, 2  ;;  %v645_v1 = vadd.f32 %v644_v29, %v643_v24 }
 0x182   : > { %v578_v16 = vadd.f32 %v577_v30, %v576_v28  ;;  %v646_v31 = vrot.slane %v645_v1, 2 }
 0x184   : > { %v579_v32 = vrot.slane %v578_v16, 1  ;;  %v647_v26 = vadd.f32 %v646_v31, %v645_v1 }
 0x186   : > { %v648_v33 = vrot.slane %v647_v26, 1  ;;  %v580_v14 = vadd.f32 %v579_v32, %v578_v16 }
 0x188   : > { %v649_v22 = vadd.f32 %v648_v33, %v647_v26 }
 0x18a   : > { %v651_v34 = vsel %vm650_vm2, %v580_v14, %v649_v22 }
 0x18b   : > { %652 = vst [vmem:[%s195_s21] sm:$0x3] %v651_v34 }
 0x18c   : > { %1042 = shalt.err (!%p1039_p5)
}
 0x18d   : > { %s1043_s3 = scalar_lea.hbm %s1396_s5, 32  ;;  %s1047_s16 = scalar_lea.hbm %s1447_s2, 64 }
 0x18e   : > { %p1044_p9 = scmp.ne.s32.totalorder %s1396_s5, %s1043_s3  ;;  %p1048_p3 = scmp.lt.u32.totalorder %s1396_s5, %s1447_s2 }
 0x18f   : > { %p1049_p7 = scmp.lt.u32.totalorder %s1047_s16, %s1043_s3  ;;  %p1051_p4 = scmp.lt.u32.totalorder %s1043_s3, %s1396_s5 }
 0x190   : > { %p1045_p1 = pnand %p1044_p9, %p1236_p10 }
 0x191   : > { %p1050_p13 = por %p1049_p7, %p1048_p3 }
 0x192   : > { %p1046_p2 = pneg %p1045_p1 }
 0x193   : > { %p1052_p6 = por %p1051_p4, %p1050_p13 }
 0x195   : > { %p1053_p8 = pnand %p1052_p6, %p1046_p2 }
 0x197   : > { %1056 = shalt.err (!%p1053_p8)
}
 0x198   : > { %883 = dma.vmem_to_hbm [thread:$0]  (%p1236_p10), %s1398_s6, 32, %s1396_s5, %s654_s8  }
 0x199 PF: > { %s680_s29 = sand.u32 1, %s1095_s9   ;;  %p1465_p12 = scmp.ne.s32.totalorder %s1455_s20, 0 }
 0x19a   : > { %p1466_p11 = scmp.ge.s32.totalorder %s1115_s14, 2  ;;  %s681_s17 = scalar_lea.sflag [#allocation4], %s680_s29 }
 0x19c   : > { %p894_p0 = pnand %p1466_p11, %p1465_p12 }
 0x19e   : > { %1090 = dma.done.wait (!%p894_p0), %s681_s17, 32  }
 0x19f   : > { %1092 = vsyncadd (!%p894_p0), %s681_s17, 4294967264  ;;  %s19_s14 = sadd.s32 1, %s1115_s14   ;;  %s1467_s9 = smov %s1099_s10 }
 0x1a0   : > { %p16_p5 = scmp.ge.s32.totalorder %s19_s14, 4   ;;  %s1468_s10 = smov %s1103_s11 }
 0x1a1   : > { %s1469_s11 = smov %s1245_s28  ;;  %s1470_s12 = smov %s1111_s13 }
 0x1a2   : > { %s1471_s13 = smov %s1473_s25  ;;  %18 = sbr.rel (!%p16_p5) target bundleno = 7 (0x7), region = 77 }
 0x1a9   :  { %686 = vsyncpa [#allocation3], 1 }
 0x1aa   :  { %688 = vsyncpa [#allocation3 + $0x1], 1 }
 0x1ab   :  { %689 = vsyncpa [#allocation6], 1 }
 0x1ac   :  { %690 = vsyncpa [#allocation4], 1 }
 0x1ad   :  { %692 = vsyncpa [#allocation4 + $0x1], 1 }

</bundles_post_ra>
